<compile_context>
chip_gen: v6e
topology: v6e:2x2x1
jax: 0.10.0
libtpu: 0.0.40
codegen_flags: <defaults>
</compile_context>

<pallas_src>
import jax
import jax.numpy as jnp
from jax.experimental import pallas as pl
from jax.experimental.pallas import tpu as pltpu


def _round_up(x, m):
    return ((x + m - 1) // m) * m


def dan_kernel(ids_ref, e1_ref, w2_ref, wdiff_ref, slab_ref, out_ref):
    ids = ids_ref[...]                       # [BB, S] int32
    BB, S = ids.shape
    V = e1_ref.shape[0]
    HP = out_ref.shape[1]                    # lane-padded feature width (128)

    # ---- bag-of-words counts: S unrolled VPU compares, int32 accumulate ------
    iota_v = jax.lax.broadcasted_iota(jnp.int32, (BB, V), 1)
    bow = jnp.zeros((BB, V), jnp.int32)
    for s in range(S):                       # S is small & static -> full unroll
        bow = bow + (ids[:, s:s + 1] == iota_v).astype(jnp.int32)
    bow = bow.astype(e1_ref.dtype)           # single convert (counts <= S, exact)

    # ---- one matmul: lanes [:H] = (sum of non-pad embeddings) @ (BN1-folded w1),
    #      lane HP-1 = number of non-pad tokens --------------------------------
    acc = jnp.dot(bow, e1_ref[...], preferred_element_type=jnp.float32)   # [BB, HP]
    count = acc[:, HP - 1:HP]                                             # [BB, 1]
    inv = pl.reciprocal(jnp.maximum(count, 1.0), approx=True)
    # count==0 -> acc row is exactly 0 -> h1 = relu(b1), matching the torch.zeros(20) branch

    b1 = slab_ref[0:1, :]
    b2 = slab_ref[1:2, :]
    oh0 = slab_ref[2:3, :]                   # one-hot at lane H     (class-0 prob)
    oh1 = slab_ref[3:4, :]                   # one-hot at lane H + 1 (class-1 prob)
    bdiff = slab_ref[4:5, 0:1]               # bo[1] - bo[0]

    # ---- hidden layers (BatchNorm folded into weights) + ReLU, lane-dense ----
    h1 = jnp.maximum(acc * inv + b1, 0.0)                                 # [BB, HP]
    h2 = jnp.maximum(
        jnp.dot(h1.astype(w2_ref.dtype), w2_ref[...],
                preferred_element_type=jnp.float32) + b2, 0.0)            # [BB, HP]

    # ---- dense_out + 2-class softmax == sigmoid of the logit difference ------
    # the logit dot rides the idle MXU instead of the saturated VALU/XLU
    d = jnp.dot(h2.astype(wdiff_ref.dtype), wdiff_ref[...],
                preferred_element_type=jnp.float32) + bdiff               # [BB, 1]
    p1 = 1.0 / (1.0 + jnp.exp(-d))
    p0 = 1.0 - p1

    # single lane-dense store: lanes [:H] = h, lanes [H:H+2] = probs
    # (h2's padded lanes are exactly 0 since w2p columns >= H and b2 pads are 0)
    out_ref[...] = (h2 + p0 * oh0 + p1 * oh1).astype(out_ref.dtype)


def custom_dan_forward(ids, params, *, block_b=1024,
                       matmul_dtype=jnp.bfloat16, out_dtype=jnp.float32):
    """Eval-mode CustomDAN forward inside one Pallas kernel. Returns (h, probs)."""
    emb = params["embeddings"]               # [V, D]
    V, D = emb.shape
    B, S = ids.shape
    H = params["w1"].shape[0]                # torch layout [out, in]
    C = params["wo"].shape[0]
    HP = 128
    assert H + C < HP                        # prob lanes must not hit the count lane HP-1
    eps = 1e-5

    # ---- parameter glue (plain JAX, once per call, outside the kernel) -------
    # fold eval-mode BatchNorm (running_mean=0, running_var=1) into the weights
    s1 = params["gamma1"] / jnp.sqrt(1.0 + eps)
    s2 = params["gamma2"] / jnp.sqrt(1.0 + eps)
    w1f = params["w1"].T * s1[None, :]                        # [D, H]
    b1f = params["b1"] * s1 + params["beta1"]                 # [H]
    w2f = params["w2"].T * s2[None, :]                        # [H, H]
    b2f = params["b2"] * s2 + params["beta2"]                 # [H]
    wdiff = params["wo"][1] - params["wo"][0]                 # [H]
    bdiff = params["bo"][1] - params["bo"][0]                 # []

    # fold the first Linear into the embedding table; pack z (non-zero-row flag /
    # per-token count contribution) into the last padded lane
    z = (jnp.sum(emb, axis=1) != 0.0).astype(jnp.float32)     # [V]
    E1 = jnp.dot(emb * z[:, None], w1f)                       # [V, H]
    e1p = (jnp.zeros((V, HP), jnp.float32)
           .at[:, :H].set(E1)
           .at[:, HP - 1].set(z))

    w2p = jnp.zeros((HP, HP), jnp.float32).at[:H, :H].set(w2f)
    wcol = jnp.zeros((HP, 1), jnp.float32).at[:H, 0].set(wdiff)

    slab = (jnp.zeros((8, HP), jnp.float32)
            .at[0, :H].set(b1f)
            .at[1, :H].set(b2f)
            .at[2, H].set(1.0)                # one-hot row for p0
            .at[3, H + 1].set(1.0)            # one-hot row for p1
            .at[4, 0].set(bdiff))

    e1p = e1p.astype(matmul_dtype)
    w2p = w2p.astype(matmul_dtype)
    wcol = wcol.astype(matmul_dtype)
    ids = ids.astype(jnp.int32)

    # ---- batch blocking: big blocks, but >= 2 grid steps when B is large so
    # both v7x TensorCores get work ("parallel" grid axis) ----------------------
    BB = min(block_b, max(8, _round_up(pl.cdiv(B, 2), 8)))
    if BB >= B:
        BB = B
    grid = (pl.cdiv(B, BB),)

    out = pl.pallas_call(
        dan_kernel,
        out_shape=jax.ShapeDtypeStruct((B, HP), out_dtype),
        grid=grid,
        in_specs=[
            pl.BlockSpec((BB, S), lambda i: (i, 0)),          # ids (blocked over batch)
            pl.BlockSpec((V, HP), lambda i: (0, 0)),          # E1 | z  (whole array)
            pl.BlockSpec((HP, HP), lambda i: (0, 0)),         # w2 (BN folded, padded)
            pl.BlockSpec((HP, 1), lambda i: (0, 0)),          # wo[1]-wo[0] column
            pl.BlockSpec((8, HP), lambda i: (0, 0)),          # packed bias / one-hot slab
        ],
        out_specs=pl.BlockSpec((BB, HP), lambda i: (i, 0)),
        compiler_params=pltpu.CompilerParams(
            dimension_semantics=("parallel",)),
    )(ids, e1p, w2p, wcol, slab)

    return out[:, :H], out[:, H:H + C]


def init_params(key, vocab=64, dim=20, hidden=20, classes=2):
    ks = jax.random.split(key, 8)

    emb = jax.random.normal(ks[0], (vocab, dim), jnp.float32)
    emb = emb.at[0].set(0.0)  # padding row -> excluded by the sum!=0 mask

    def linear(k, fan_in, fan_out):
        kw, kb = jax.random.split(k)
        bound = 1.0 / jnp.sqrt(jnp.float32(fan_in))
        w = jax.random.uniform(kw, (fan_out, fan_in), jnp.float32, -bound, bound)
        b = jax.random.uniform(kb, (fan_out,), jnp.float32, -bound, bound)
        return w, b

    w1, b1 = linear(ks[1], dim, hidden)
    w2, b2 = linear(ks[2], hidden, hidden)
    wo, bo = linear(ks[3], hidden, classes)

    gamma1 = jax.random.uniform(ks[4], (hidden,), jnp.float32, 0.5, 1.5)
    beta1 = 0.1 * jax.random.normal(ks[5], (hidden,), jnp.float32)
    gamma2 = jax.random.uniform(ks[6], (hidden,), jnp.float32, 0.5, 1.5)
    beta2 = 0.1 * jax.random.normal(ks[7], (hidden,), jnp.float32)

    return {"embeddings": emb,
            "w1": w1, "b1": b1, "gamma1": gamma1, "beta1": beta1,
            "w2": w2, "b2": b2, "gamma2": gamma2, "beta2": beta2,
            "wo": wo, "bo": bo}


if __name__ == "__main__":
    key = jax.random.PRNGKey(0)
    k_param, k_ids = jax.random.split(key)

    VOCAB, DIM, HIDDEN, CLASSES = 64, 20, 20, 2
    B, S = 8, 8

    params = init_params(k_param, VOCAB, DIM, HIDDEN, CLASSES)

    ids = jax.random.randint(k_ids, (B, S), 0, VOCAB, dtype=jnp.int32)
    ids = ids.at[:, -2:].set(0)   # some padding tokens per example
    ids = ids.at[3, :].set(0)     # one all-padding example -> zero-vector branch

    h, probs = jax.jit(custom_dan_forward)(ids, params)
    jax.block_until_ready((h, probs))

    assert h.shape == (B, HIDDEN) and probs.shape == (B, CLASSES)
    assert bool(jnp.all(jnp.isfinite(h))) and bool(jnp.all(jnp.isfinite(probs)))
    assert bool(jnp.all(probs >= 0.0)) and bool(jnp.all(probs <= 1.0))
    assert bool(jnp.allclose(jnp.sum(probs, axis=-1), 1.0, atol=1e-5))
    print("KERNEL_OK")
</pallas_src>

<mosaic_0001>
module attributes {stable_mosaic.version = 11 : i64} {
  func.func @dan_kernel(%arg0: i32, %arg1: memref<8x8xi32, #tpu.memory_space<vmem>>, %arg2: memref<64x128xbf16, #tpu.memory_space<vmem>>, %arg3: memref<128x128xbf16, #tpu.memory_space<vmem>>, %arg4: memref<128x1xbf16, #tpu.memory_space<vmem>>, %arg5: memref<8x128xf32, #tpu.memory_space<vmem>>, %arg6: memref<8x128xf32, #tpu.memory_space<vmem>>) attributes {dimension_semantics = [#tpu.dimension_semantics<parallel>], iteration_bounds = array<i64: 1>, scalar_prefetch = 0 : i64, scratch_operands = 0 : i64, tpu.core_type = #tpu.core_type<tc>, window_params = [{transform_indices = @transform_0, window_bounds = array<i64: 8, 8>}, {pipeline_mode = #tpu.pipeline_mode<synchronous>, transform_indices = @transform_1, window_bounds = array<i64: 64, 128>}, {pipeline_mode = #tpu.pipeline_mode<synchronous>, transform_indices = @transform_2, window_bounds = array<i64: 128, 128>}, {pipeline_mode = #tpu.pipeline_mode<synchronous>, transform_indices = @transform_3, window_bounds = array<i64: 128, 1>}, {pipeline_mode = #tpu.pipeline_mode<synchronous>, transform_indices = @transform_4, window_bounds = array<i64: 8, 128>}, {transform_indices = @transform_5, window_bounds = array<i64: 8, 128>}]} {
    %c0 = arith.constant 0 : index
    %c0_0 = arith.constant 0 : index
    %0 = vector.load %arg1[%c0, %c0_0] : memref<8x8xi32, #tpu.memory_space<vmem>>, vector<8x8xi32>
    %1 = tpu.iota {dimensions = array<i32: 1>} : vector<8x64xi32>
    %c0_i32 = arith.constant 0 : i32
    %2 = vector.broadcast %c0_i32 : i32 to vector<8x64xi32>
    %3 = vector.extract_strided_slice %0 {offsets = [0, 0], sizes = [8, 1], strides = [1, 1]} : vector<8x8xi32> to vector<8x1xi32>
    %4 = vector.broadcast %3 : vector<8x1xi32> to vector<8x64xi32>
    %5 = arith.cmpi eq, %4, %1 : vector<8x64xi32>
    %6 = arith.extui %5 : vector<8x64xi1> to vector<8x64xi32>
    %7 = arith.addi %2, %6 : vector<8x64xi32>
    %8 = vector.extract_strided_slice %0 {offsets = [0, 1], sizes = [8, 1], strides = [1, 1]} : vector<8x8xi32> to vector<8x1xi32>
    %9 = vector.broadcast %8 : vector<8x1xi32> to vector<8x64xi32>
    %10 = arith.cmpi eq, %9, %1 : vector<8x64xi32>
    %11 = arith.extui %10 : vector<8x64xi1> to vector<8x64xi32>
    %12 = arith.addi %7, %11 : vector<8x64xi32>
    %13 = vector.extract_strided_slice %0 {offsets = [0, 2], sizes = [8, 1], strides = [1, 1]} : vector<8x8xi32> to vector<8x1xi32>
    %14 = vector.broadcast %13 : vector<8x1xi32> to vector<8x64xi32>
    %15 = arith.cmpi eq, %14, %1 : vector<8x64xi32>
    %16 = arith.extui %15 : vector<8x64xi1> to vector<8x64xi32>
    %17 = arith.addi %12, %16 : vector<8x64xi32>
    %18 = vector.extract_strided_slice %0 {offsets = [0, 3], sizes = [8, 1], strides = [1, 1]} : vector<8x8xi32> to vector<8x1xi32>
    %19 = vector.broadcast %18 : vector<8x1xi32> to vector<8x64xi32>
    %20 = arith.cmpi eq, %19, %1 : vector<8x64xi32>
    %21 = arith.extui %20 : vector<8x64xi1> to vector<8x64xi32>
    %22 = arith.addi %17, %21 : vector<8x64xi32>
    %23 = vector.extract_strided_slice %0 {offsets = [0, 4], sizes = [8, 1], strides = [1, 1]} : vector<8x8xi32> to vector<8x1xi32>
    %24 = vector.broadcast %23 : vector<8x1xi32> to vector<8x64xi32>
    %25 = arith.cmpi eq, %24, %1 : vector<8x64xi32>
    %26 = arith.extui %25 : vector<8x64xi1> to vector<8x64xi32>
    %27 = arith.addi %22, %26 : vector<8x64xi32>
    %28 = vector.extract_strided_slice %0 {offsets = [0, 5], sizes = [8, 1], strides = [1, 1]} : vector<8x8xi32> to vector<8x1xi32>
    %29 = vector.broadcast %28 : vector<8x1xi32> to vector<8x64xi32>
    %30 = arith.cmpi eq, %29, %1 : vector<8x64xi32>
    %31 = arith.extui %30 : vector<8x64xi1> to vector<8x64xi32>
    %32 = arith.addi %27, %31 : vector<8x64xi32>
    %33 = vector.extract_strided_slice %0 {offsets = [0, 6], sizes = [8, 1], strides = [1, 1]} : vector<8x8xi32> to vector<8x1xi32>
    %34 = vector.broadcast %33 : vector<8x1xi32> to vector<8x64xi32>
    %35 = arith.cmpi eq, %34, %1 : vector<8x64xi32>
    %36 = arith.extui %35 : vector<8x64xi1> to vector<8x64xi32>
    %37 = arith.addi %32, %36 : vector<8x64xi32>
    %38 = vector.extract_strided_slice %0 {offsets = [0, 7], sizes = [8, 1], strides = [1, 1]} : vector<8x8xi32> to vector<8x1xi32>
    %39 = vector.broadcast %38 : vector<8x1xi32> to vector<8x64xi32>
    %40 = arith.cmpi eq, %39, %1 : vector<8x64xi32>
    %41 = arith.extui %40 : vector<8x64xi1> to vector<8x64xi32>
    %42 = arith.addi %37, %41 : vector<8x64xi32>
    %43 = arith.sitofp %42 : vector<8x64xi32> to vector<8x64xbf16>
    %c0_1 = arith.constant 0 : index
    %c0_2 = arith.constant 0 : index
    %44 = vector.load %arg2[%c0_1, %c0_2] : memref<64x128xbf16, #tpu.memory_space<vmem>>, vector<64x128xbf16>
    %cst = arith.constant dense<0.000000e+00> : vector<8x128xf32>
    %45 = tpu.matmul %43, %44, %cst {dimension_numbers = #tpu.dot_dimension_numbers<[1], [0], [0], [1], [0, 0, 1, 1], [], []>} : vector<8x64xbf16>, vector<64x128xbf16>, vector<8x128xf32> -> vector<8x128xf32>
    %46 = vector.extract_strided_slice %45 {offsets = [0, 127], sizes = [8, 1], strides = [1, 1]} : vector<8x128xf32> to vector<8x1xf32>
    %cst_3 = arith.constant 1.000000e+00 : f32
    %47 = vector.broadcast %cst_3 : f32 to vector<8x1xf32>
    %48 = arith.maximumf %46, %47 : vector<8x1xf32>
    %49 = tpu.reciprocal %48 {approx = true} : vector<8x1xf32> -> vector<8x1xf32>
    %c0_4 = arith.constant 0 : index
    %c0_5 = arith.constant 0 : index
    %50 = vector.load %arg5[%c0_4, %c0_5] : memref<8x128xf32, #tpu.memory_space<vmem>>, vector<1x128xf32>
    %c1 = arith.constant 1 : index
    %c0_6 = arith.constant 0 : index
    %51 = vector.load %arg5[%c1, %c0_6] : memref<8x128xf32, #tpu.memory_space<vmem>>, vector<1x128xf32>
    %c2 = arith.constant 2 : index
    %c0_7 = arith.constant 0 : index
    %52 = vector.load %arg5[%c2, %c0_7] : memref<8x128xf32, #tpu.memory_space<vmem>>, vector<1x128xf32>
    %c3 = arith.constant 3 : index
    %c0_8 = arith.constant 0 : index
    %53 = vector.load %arg5[%c3, %c0_8] : memref<8x128xf32, #tpu.memory_space<vmem>>, vector<1x128xf32>
    %c4 = arith.constant 4 : index
    %c0_9 = arith.constant 0 : index
    %54 = vector.load %arg5[%c4, %c0_9] : memref<8x128xf32, #tpu.memory_space<vmem>>, vector<1x1xf32>
    %55 = vector.broadcast %49 : vector<8x1xf32> to vector<8x128xf32>
    %56 = arith.mulf %45, %55 : vector<8x128xf32>
    %57 = vector.broadcast %50 : vector<1x128xf32> to vector<8x128xf32>
    %58 = arith.addf %56, %57 : vector<8x128xf32>
    %cst_10 = arith.constant 0.000000e+00 : f32
    %59 = vector.broadcast %cst_10 : f32 to vector<8x128xf32>
    %60 = arith.maximumf %58, %59 : vector<8x128xf32>
    %61 = arith.truncf %60 : vector<8x128xf32> to vector<8x128xbf16>
    %c0_11 = arith.constant 0 : index
    %c0_12 = arith.constant 0 : index
    %62 = vector.load %arg3[%c0_11, %c0_12] : memref<128x128xbf16, #tpu.memory_space<vmem>>, vector<128x128xbf16>
    %cst_13 = arith.constant dense<0.000000e+00> : vector<8x128xf32>
    %63 = tpu.matmul %61, %62, %cst_13 {dimension_numbers = #tpu.dot_dimension_numbers<[1], [0], [0], [1], [0, 0, 1, 1], [], []>} : vector<8x128xbf16>, vector<128x128xbf16>, vector<8x128xf32> -> vector<8x128xf32>
    %64 = vector.broadcast %51 : vector<1x128xf32> to vector<8x128xf32>
    %65 = arith.addf %63, %64 : vector<8x128xf32>
    %cst_14 = arith.constant 0.000000e+00 : f32
    %66 = vector.broadcast %cst_14 : f32 to vector<8x128xf32>
    %67 = arith.maximumf %65, %66 : vector<8x128xf32>
    %68 = arith.truncf %67 : vector<8x128xf32> to vector<8x128xbf16>
    %c0_15 = arith.constant 0 : index
    %c0_16 = arith.constant 0 : index
    %69 = vector.load %arg4[%c0_15, %c0_16] : memref<128x1xbf16, #tpu.memory_space<vmem>>, vector<128x1xbf16>
    %cst_17 = arith.constant dense<0.000000e+00> : vector<8x1xf32>
    %70 = tpu.matmul %68, %69, %cst_17 {dimension_numbers = #tpu.dot_dimension_numbers<[1], [0], [0], [1], [0, 0, 1, 1], [], []>} : vector<8x128xbf16>, vector<128x1xbf16>, vector<8x1xf32> -> vector<8x1xf32>
    %71 = vector.broadcast %54 : vector<1x1xf32> to vector<8x1xf32>
    %72 = arith.addf %70, %71 : vector<8x1xf32>
    %cst_18 = arith.constant 0.000000e+00 : f32
    %73 = vector.broadcast %cst_18 : f32 to vector<8x1xf32>
    %74 = arith.subf %73, %72 : vector<8x1xf32>
    %75 = math.exp %74 : vector<8x1xf32>
    %cst_19 = arith.constant 1.000000e+00 : f32
    %76 = vector.broadcast %cst_19 : f32 to vector<8x1xf32>
    %77 = arith.addf %76, %75 : vector<8x1xf32>
    %cst_20 = arith.constant 1.000000e+00 : f32
    %78 = vector.broadcast %cst_20 : f32 to vector<8x1xf32>
    %79 = arith.divf %78, %77 : vector<8x1xf32>
    %cst_21 = arith.constant 1.000000e+00 : f32
    %80 = vector.broadcast %cst_21 : f32 to vector<8x1xf32>
    %81 = arith.subf %80, %79 : vector<8x1xf32>
    %82 = vector.broadcast %81 : vector<8x1xf32> to vector<8x128xf32>
    %83 = vector.broadcast %52 : vector<1x128xf32> to vector<8x128xf32>
    %84 = arith.mulf %82, %83 : vector<8x128xf32>
    %85 = arith.addf %67, %84 : vector<8x128xf32>
    %86 = vector.broadcast %79 : vector<8x1xf32> to vector<8x128xf32>
    %87 = vector.broadcast %53 : vector<1x128xf32> to vector<8x128xf32>
    %88 = arith.mulf %86, %87 : vector<8x128xf32>
    %89 = arith.addf %85, %88 : vector<8x128xf32>
    %c0_22 = arith.constant 0 : index
    %c0_23 = arith.constant 0 : index
    %90 = vector.load %arg6[%c0_22, %c0_23] : memref<8x128xf32, #tpu.memory_space<vmem>>, vector<8x128xf32>
    tpu.vector_store %arg6[%c0_22, %c0_23], %89 {strides = array<i32>} : memref<8x128xf32, #tpu.memory_space<vmem>>, vector<8x128xf32>,
    return
  }
  func.func @transform_0(%arg0: i32) -> (i32, i32) {
    %c0_i32 = arith.constant 0 : i32
    %c0_i32_0 = arith.constant 0 : i32
    return %arg0, %c0_i32 : i32, i32
  }
  func.func @transform_1(%arg0: i32) -> (i32, i32) {
    %c0_i32 = arith.constant 0 : i32
    %c0_i32_0 = arith.constant 0 : i32
    %c0_i32_1 = arith.constant 0 : i32
    return %c0_i32, %c0_i32_0 : i32, i32
  }
  func.func @transform_2(%arg0: i32) -> (i32, i32) {
    %c0_i32 = arith.constant 0 : i32
    %c0_i32_0 = arith.constant 0 : i32
    %c0_i32_1 = arith.constant 0 : i32
    return %c0_i32, %c0_i32_0 : i32, i32
  }
  func.func @transform_3(%arg0: i32) -> (i32, i32) {
    %c0_i32 = arith.constant 0 : i32
    %c0_i32_0 = arith.constant 0 : i32
    %c0_i32_1 = arith.constant 0 : i32
    return %c0_i32, %c0_i32_0 : i32, i32
  }
  func.func @transform_4(%arg0: i32) -> (i32, i32) {
    %c0_i32 = arith.constant 0 : i32
    %c0_i32_0 = arith.constant 0 : i32
    %c0_i32_1 = arith.constant 0 : i32
    return %c0_i32, %c0_i32_0 : i32, i32
  }
  func.func @transform_5(%arg0: i32) -> (i32, i32) {
    %c0_i32 = arith.constant 0 : i32
    %c0_i32_0 = arith.constant 0 : i32
    return %arg0, %c0_i32 : i32, i32
  }
}

</mosaic_0001>

<bundles_post_ra>
// kernel: custom_dan_forward.1
= control target key start
LH: loop header
LB: loop body
LE: loop exit
PB: predicated region body
PF: predicated region fallthrough
CT: control target
= control target key end

     0   :  { %v570_v0 = vmov 2   ;;  %v571_v1 = vmov 0   ;;  %v572_v3 = vmov 3   ;;  %v573_v4 = vmov 1   ;;  %s729_s0 = inlined_call_operand.vmem [shape: s32[8,8], index: 0, kind: input, shape index: {}]   ;;  %s730_s1 = inlined_call_operand.vmem [shape: bf16[64,128], index: 1, kind: input, shape index: {}]   ;;  %s731_s2 = inlined_call_operand.vmem [shape: bf16[128,128], index: 2, kind: input, shape index: {}]   ;;  %s732_s3 = inlined_call_operand.vmem [shape: bf16[128,1], index: 3, kind: input, shape index: {}]   ;;  %s733_s4 = inlined_call_operand.vmem [shape: f32[8,128], index: 4, kind: input, shape index: {}]   ;;  %s734_s5 = inlined_call_operand.vmem [shape: f32[8,128], index: 5, kind: output, shape index: {}]  }
   0x1   :  { %535 = vset.pattern.permute.xlu1 %v570_v0  ;;  %533 = vset.pattern.permute.xlu0 %v571_v1  ;;  %v21_v2 = vld [vmem:[%s729_s0] sm:$0xff]  ;;  %v544_v5 = vld [vmem:[%s730_s1 + $0x18] sm:$0xff]   ;;  %v574_v6 = vmov 0.0   ;;  %v575_v7 = vmov 4   ;;  %v576_v8 = vmov 5   ;;  %v545_v9 = vld [vmem:[%s730_s1 + $0x10] sm:$0xff]   ;;  %v22_v14 = vlaneseq }
   0x2   :  { %36 = vperm.xlu1 %535, %v21_v2   ;;  %25 = vperm.xlu0 %533, %v21_v2   ;;  %v577_v10 = vmov 6   ;;  %v546_v11 = vld [vmem:[%s730_s1 + $0x8] sm:$0xff]   ;;  %v578_v12 = vmov 7   ;;  %v547_v13 = vld [vmem:[%s730_s1] sm:$0xff]   ;;  %vm579_vm0 = vmmov 0   ;;  %vm105_vm9 = vcmask 523264  }
   0x3   :  { %470 = vmatprep.subr.bf16.mxu0 %v574_v6  ;;  %482 = vmatprep.subr.bf16.mxu1 %v574_v6  ;;  %v23_v17 = vand.u32 127, %v22_v14  ;;  %v580_v41 = vmov 127   ;;  %v548_v42 = vld [vmem:[%s731_s2 + $0x38] sm:$0xff]   ;;  %v549_v43 = vld [vmem:[%s731_s2 + $0x30] sm:$0xff]   ;;  %v550_v44 = vld [vmem:[%s731_s2 + $0x28] sm:$0xff]  }
   0x4   :  { %471 = vmatpush3.bf16.msra.mxu0 %v544_v5  ;;  %478 = vmatprep.mubr.msk.bf16.mxu0 %vm579_vm0, %v574_v6  ;;  %v551_v45 = vld [vmem:[%s731_s2 + $0x20] sm:$0xff]   ;;  %v552_v46 = vld [vmem:[%s731_s2 + $0x18] sm:$0xff]   ;;  %v553_v47 = vld [vmem:[%s731_s2 + $0x10] sm:$0xff]  }
   0x5   :  { %472 = vmatprep.subr.bf16.mxu0 %v574_v6  ;;  %498 = vmatprep.mubr.msk.bf16.mxu1 %vm579_vm0, %v574_v6  ;;  %v554_v53 = vld [vmem:[%s731_s2 + $0x8] sm:$0xff]   ;;  %v555_v55 = vld [vmem:[%s731_s2] sm:$0xff]   ;;  %v556_v56 = vld [vmem:[%s732_s3 + $0x38] sm:$0xff]  }
   0x6   :  { %536 = vset.pattern.permute.xlu1 %v572_v3  ;;  %534 = vset.pattern.permute.xlu0 %v573_v4  ;;  %v557_v57 = vld [vmem:[%s732_s3 + $0x30] sm:$0xff]   ;;  %v558_v58 = vld [vmem:[%s732_s3 + $0x28] sm:$0xff]   ;;  %v559_v59 = vld [vmem:[%s732_s3 + $0x20] sm:$0xff]  }
   0x7   :  { %42 = vperm.xlu1 %536, %v21_v2   ;;  %30 = vperm.xlu0 %534, %v21_v2   ;;  %v560_v60 = vld [vmem:[%s732_s3 + $0x18] sm:$0xff]   ;;  %v561_v61 = vld [vmem:[%s732_s3 + $0x10] sm:$0xff]   ;;  %v426_v62 = vld [vmem:[%s733_s4] ss:$0 sm:$0xff] }
   0x8   :  { %473 = vmatpush3.bf16.msra.mxu0 %v545_v9  ;;  %483 = vmatpush3.bf16.msra.mxu1 %v548_v42  ;;  %v562_v4 = vld [vmem:[%s732_s3 + $0x8] sm:$0xff]   ;;  %v563_v5 = vld [vmem:[%s732_s3] sm:$0xff]  }
   0x9   :  { %474 = vmatprep.subr.bf16.mxu0 %v574_v6  ;;  %484 = vmatprep.subr.bf16.mxu1 %v574_v6 }
   0xb   :  { %537 = vset.pattern.permute.xlu1 %v575_v7  ;;  %538 = vset.pattern.permute.xlu0 %v576_v8  ;;  %v427_v7 = vld [vmem:[%s733_s4 + $0x1] ss:$0 sm:$0xff] }
   0xc   :  { %48 = vperm.xlu1 %537, %v21_v2   ;;  %54 = vperm.xlu0 %538, %v21_v2  }
   0xd   :  { %475 = vmatpush3.bf16.msra.mxu0 %v546_v11  ;;  %485 = vmatpush3.bf16.msra.mxu1 %v549_v43 }
   0xe   :  { %476 = vmatprep.subr.bf16.mxu0 %v574_v6  ;;  %486 = vmatprep.subr.bf16.mxu1 %v574_v6 }
  0x10   :  { %539 = vset.pattern.permute.xlu1 %v577_v10  ;;  %541 = vset.pattern.permute.xlu0 %v580_v41 }
  0x11   :  { %60 = vperm.xlu1 %539, %v21_v2   ;;  %477 = vmatpush3.bf16.msra.mxu0 %v547_v13 }
  0x12   :  { %502 = vmatprep.subr.bf16.mxu0 %v574_v6  ;;  %487 = vmatpush3.bf16.msra.mxu1 %v550_v44 }
  0x13   :  { %488 = vmatprep.subr.bf16.mxu1 %v574_v6 }
  0x15   :  { %540 = vset.pattern.permute.xlu1 %v578_v12 }
  0x16   :  { %66 = vperm.xlu1 %540, %v21_v2   ;;  %489 = vmatpush3.bf16.msra.mxu1 %v551_v45 }
  0x17   :  { %490 = vmatprep.subr.bf16.mxu1 %v574_v6 }
  0x1a   :  { %542 = vset.pattern.permute.xlu1 %v571_v1  ;;  %491 = vmatpush3.bf16.msra.mxu1 %v552_v46 }
  0x1b   :  { %492 = vmatprep.subr.bf16.mxu1 %v574_v6 }
  0x1e   :  { %493 = vmatpush3.bf16.msra.mxu1 %v553_v47 }
  0x1f   :  { %494 = vmatprep.subr.bf16.mxu1 %v574_v6 }
  0x22   :  { %495 = vmatpush3.bf16.msra.mxu1 %v554_v53 }
  0x23   :  { %496 = vmatprep.subr.bf16.mxu1 %v574_v6 }
  0x26   :  { %497 = vmatpush3.bf16.msra.mxu1 %v555_v55 }
  0x7d   :  { %v37_v15 = vpop.permute.xlu1 %36  ;;  %v26_v16 = vpop.permute.xlu0 %25 }
  0x7e   :  { %vm27_vm1 = vcmp.eq.s32.totalorder %v26_v16, %v23_v17  ;;  %vm38_vm2 = vcmp.eq.s32.totalorder %v37_v15, %v23_v17 }
  0x7f   :  { %v28_v20 = vsel %vm27_vm1, 1, %v571_v1  ;;  %v39_v23 = vsel %vm38_vm2, 1, %v571_v1 }
  0x82   :  { %v43_v18 = vpop.permute.xlu1 %42  ;;  %v31_v19 = vpop.permute.xlu0 %30 }
  0x83   :  { %vm32_vm3 = vcmp.eq.s32.totalorder %v31_v19, %v23_v17  ;;  %vm44_vm4 = vcmp.eq.s32.totalorder %v43_v18, %v23_v17 }
  0x84   :  { %v33_v21 = vsel %vm32_vm3, 1, %v571_v1  ;;  %v45_v27 = vsel %vm44_vm4, 1, %v571_v1 }
  0x85   :  { %v34_v22 = vadd.s32 %v33_v21, %v28_v20 }
  0x87   :  { %v40_v24 = vadd.s32 %v39_v23, %v34_v22  ;;  %v49_v25 = vpop.permute.xlu1 %48  ;;  %v55_v26 = vpop.permute.xlu0 %54 }
  0x88   :  { %vm50_vm5 = vcmp.eq.s32.totalorder %v49_v25, %v23_v17  ;;  %vm56_vm6 = vcmp.eq.s32.totalorder %v55_v26, %v23_v17  ;;  %v445_v26 = vld [vmem:[%s733_s4 + $0x2] ss:$0 sm:$0xff] }
  0x89   :  { %v46_v28 = vadd.s32 %v45_v27, %v40_v24  ;;  %v51_v29 = vsel %vm50_vm5, 1, %v571_v1  ;;  %v57_v31 = vsel %vm56_vm6, 1, %v571_v1 }
  0x8b   :  { %v52_v30 = vadd.s32 %v51_v29, %v46_v28  ;;  %v446_v29 = vld [vmem:[%s733_s4 + $0x3] ss:$0 sm:$0xff] }
  0x8c   :  { %v61_v32 = vpop.permute.xlu1 %60 }
  0x8d   :  { %vm62_vm7 = vcmp.eq.s32.totalorder %v61_v32, %v23_v17  ;;  %v58_v33 = vadd.s32 %v57_v31, %v52_v30 }
  0x8e   :  { %v63_v34 = vsel %vm62_vm7, 1, %v571_v1 }
  0x8f   :  { %v64_v36 = vadd.s32 %v63_v34, %v58_v33 }
  0x91   :  { %v67_v35 = vpop.permute.xlu1 %66 }
  0x92   :  { %vm68_vm8 = vcmp.eq.s32.totalorder %v67_v35, %v23_v17 }
  0x93   :  { %v69_v37 = vsel %vm68_vm8, 1, %v571_v1 }
  0x94   :  { %v70_v38 = vadd.s32 %v69_v37, %v64_v36 }
  0x96   :  { %v71_v39 = vcvt.s32.f32 %v70_v38 }
  0x98   :  { %v72_v40 = vpack.c.bf16 %v71_v39, %v71_v39 }
  0x9a   :  { %479 = vmatmul.mubr.msk.bf16.vlgmr.msra.gmra.mxu0 %vm105_vm9, %v72_v40 }
  0x9b   :  { %518 = vmatprep.mubr.msk.bf16.mxu0 %vm579_vm0, %v574_v6  ;;  %503 = vmatpush3.bf16.msra.mxu0 %v556_v56 }
  0x9c   :  { %504 = vmatprep.subr.bf16.mxu0 %v574_v6 }
  0x9f   :  { %505 = vmatpush3.bf16.msra.mxu0 %v557_v57 }
  0xa0   :  { %506 = vmatprep.subr.bf16.mxu0 %v574_v6 }
  0xa3   :  { %507 = vmatpush3.bf16.msra.mxu0 %v558_v58 }
  0xa4   :  { %508 = vmatprep.subr.bf16.mxu0 %v574_v6 }
  0xa7   :  { %509 = vmatpush3.bf16.msra.mxu0 %v559_v59 }
  0xa8   :  { %510 = vmatprep.subr.bf16.mxu0 %v574_v6 }
  0xab   :  { %511 = vmatpush3.bf16.msra.mxu0 %v560_v60 }
  0xac   :  { %512 = vmatprep.subr.bf16.mxu0 %v574_v6 }
  0xaf   :  { %513 = vmatpush3.bf16.msra.mxu0 %v561_v61 }
  0xb0   :  { %514 = vmatprep.subr.bf16.mxu0 %v574_v6 }
  0xb3   :  { %515 = vmatpush3.bf16.msra.mxu0 %v562_v4 }
  0xb4   :  { %516 = vmatprep.subr.bf16.mxu0 %v574_v6  ;;  %v436_v6 = vld [vmem:[%s733_s4 + $0x4] ss:$0 sm:$0xff] }
  0xb7   :  { %517 = vmatpush3.bf16.msra.mxu0 %v563_v5 }
 0x15a   :  { %v143_v48 = vpop.f32.mrf.mxu0 }
 0x15b   :  { %v149_v49 = vmax.f32 %v143_v48, 1.0 }
 0x15c   :  { %v480_v50 = vpop.f32.mrf.mxu0 }
 0x15d   :  { %564 = vrcp.f32 %v149_v49 }
 0x15e   :  { %v146_v51 = vpop.f32.mrf.mxu0 }
 0x160   :  { %v481_v52 = vpop.f32.mrf.mxu0 }
 0x16a   :  { %v565_v54 = vpop.eup %564 }
 0x16b   :  { %158 = vperm.xlu0 %541, %v565_v54  }
 0x16f   :  { %543 = vset.pattern.permute.xlu0 %v571_v1 }
 0x1e6   :  { %v159_v63 = vpop.permute.xlu0 %158 }
 0x1e7   :  { %v161_v0 = vmul.f32 %v159_v63, %v143_v48 }
 0x1e9   :  { %v166_v1 = vadd.f32 %v426_v62, %v161_v0 }
 0x1eb   :  { %v167_v2 = vmax.f32 %v166_v1, 0.0 }
 0x1ed   :  { %v168_v3 = vpack.c.bf16 %v167_v2, %v167_v2 }
 0x1ef   :  { %499 = vmatmul.mubr.bf16.vlgmr.msra.gmra.mxu1 %v168_v3 }
 0x2af   :  { %v271_v8 = vpop.f32.mrf.mxu1 }
 0x2b0   :  { %v272_v9 = vadd.f32 %v427_v7, %v271_v8 }
 0x2b1   :  { %v500_v10 = vpop.f32.mrf.mxu1 }
 0x2b2   :  { %v277_v11 = vmax.f32 %v272_v9, 0.0 }
 0x2b3   :  { %v274_v12 = vpop.f32.mrf.mxu1 }
 0x2b4   :  { %v278_v13 = vpack.c.bf16 %v277_v11, %v277_v11 }
 0x2b5   :  { %v501_v14 = vpop.f32.mrf.mxu1 }
 0x2b6   :  { %519 = vmatmul.mubr.bf16.vlgmr.msra.gmra.mxu0 %v278_v13 }
 0x376   :  { %v381_v15 = vpop.f32.mrf.mxu0 }
 0x377   :  { %v382_v16 = vadd.f32 %v436_v6, %v381_v15 }
 0x378   :  { %v520_v17 = vpop.f32.mrf.mxu0 }
 0x379   :  { %v387_v18 = vsub.f32 0.0, %v382_v16 }
 0x37a   :  { %v384_v19 = vpop.f32.mrf.mxu0 }
 0x37b   :  { %v388_v20 = vmul.f32 1.442695, %v387_v18 }
 0x37c   :  { %v521_v21 = vpop.f32.mrf.mxu0 }
 0x37d   :  { %566 = vpow2.f32 %v388_v20 }
 0x38a   :  { %v567_v22 = vpop.eup %566 }
 0x38b   :  { %v390_v23 = vadd.f32 1.0, %v567_v22 }
 0x38d   :  { %568 = vrcp.f32 %v390_v23 }
 0x39a   :  { %v569_v24 = vpop.eup %568 }
 0x39b   :  { %v393_v25 = vsub.f32 1.0, %v569_v24 }
 0x39d   :  { %396 = vperm.xlu1 %542, %v393_v25  }
 0x3a1   :  { %407 = vperm.xlu1 %542, %v569_v24  }
 0x418   :  { %v397_v27 = vpop.permute.xlu1 %396 }
 0x419   :  { %v403_v28 = vmul.f32 %v445_v26, %v397_v27 }
 0x41b   :  { %v404_v31 = vadd.f32 %v403_v28, %v277_v11 }
 0x41c   :  { %v408_v30 = vpop.permute.xlu1 %407 }
 0x41d   :  { %v414_v32 = vmul.f32 %v446_v29, %v408_v30 }
 0x41f   :  { %v415_v33 = vadd.f32 %v414_v32, %v404_v31 }
 0x421   :  { %416 = vst [vmem:[%s734_s5] sm:$0xff] %v415_v33 }

</bundles_post_ra>
